<compile_context>
chip_gen: v7x
topology: tpu7x:2x2x1
jax: 0.10.0
libtpu: 0.0.40
codegen_flags: <defaults>
</compile_context>

<pallas_src>
import functools

import jax
import jax.numpy as jnp
from jax import lax
from jax.experimental import pallas as pl
from jax.experimental.pallas import tpu as pltpu


# ---------------------------------------------------------------------------
# Tiling / VMEM budgeting helpers
# ---------------------------------------------------------------------------
_ROW_TILE_CAP = 512    # rows per block (good on v5e/v6e, conservative enough for v7x)
_LANE_TILE_CAP = 512   # N / K / d_ff tile cap (lane-dim tiles, multiples of 128)


def _pick_tile(dim: int, cap: int, mult: int) -> int:
    """Largest divisor of `dim` that is a multiple of `mult` and <= cap.

    Returns the full dim when dim <= cap or no aligned divisor exists.
    """
    if dim <= cap:
        return dim
    t = (cap // mult) * mult
    while t >= mult:
        if dim % t == 0:
            return t
        t -= mult
    # TODO(synk): pad / mask the last tile instead of one full-size block.
    return dim


def _vmem_limit(*blocks, scratch_bytes: int = 0) -> int:
    """Explicit scoped-VMEM budget: double-buffered blocks + scratch, with margin."""
    total = 0
    for shape, dtype in blocks:
        n = 1
        for s in shape:
            n *= int(s)
        total += 2 * n * jnp.dtype(dtype).itemsize      # double buffering
    est = int((total + scratch_bytes) * 1.5) + (4 << 20)
    # Keep >= 32 MiB (v5e default is only 16 MiB) and <= v7x physical VMEM (64 MiB).
    return max(32 << 20, min(est, 64 << 20))


# ---------------------------------------------------------------------------
# Kernel bodies
# ---------------------------------------------------------------------------
def _linear_kernel(x_ref, w_ref, b_ref, o_ref, acc_ref, *, activation, use_bf16):
    # grid = (M//tm, N//tn, K//tk); K (contraction) is the innermost reduction axis.
    k = pl.program_id(2)

    @pl.when(k == 0)
    def _():
        acc_ref[...] = jnp.zeros_like(acc_ref)

    x = x_ref[...]
    w = w_ref[...]
    if use_bf16:
        x = x.astype(jnp.bfloat16)
        w = w.astype(jnp.bfloat16)
    acc_ref[...] += jnp.dot(x, w, preferred_element_type=jnp.float32)

    @pl.when(k == pl.num_programs(2) - 1)
    def _():
        out = acc_ref[...] + b_ref[...].astype(jnp.float32)
        if activation == "relu":
            out = jnp.maximum(out, 0.0)
        o_ref[...] = out.astype(o_ref.dtype)


def _linear_residual_ln_kernel(x_ref, w_ref, b_ref, res_ref, g_ref, bt_ref,
                               o_ref, acc_ref, *, eps, use_bf16):
    # out = LayerNorm(residual + x @ W + b) * gamma + beta, K-tiled matmul.
    k = pl.program_id(1)

    @pl.when(k == 0)
    def _():
        acc_ref[...] = jnp.zeros_like(acc_ref)

    x = x_ref[...]
    w = w_ref[...]
    if use_bf16:
        x = x.astype(jnp.bfloat16)
        w = w.astype(jnp.bfloat16)
    acc_ref[...] += jnp.dot(x, w, preferred_element_type=jnp.float32)

    @pl.when(k == pl.num_programs(1) - 1)
    def _():
        h = (acc_ref[...] + b_ref[...].astype(jnp.float32)
             + res_ref[...].astype(jnp.float32))
        mean = jnp.mean(h, axis=-1, keepdims=True)
        c = h - mean
        var = jnp.mean(c * c, axis=-1, keepdims=True)
        n = c * lax.rsqrt(var + eps)
        out = n * g_ref[...].astype(jnp.float32) + bt_ref[...].astype(jnp.float32)
        o_ref[...] = out.astype(o_ref.dtype)


def _ffn_kernel(x_ref, w1_ref, b1_ref, w2_ref, b2_ref, g_ref, bt_ref,
                o_ref, acc_ref, *, eps, use_bf16):
    # Fully fused FFN: for each d_ff chunk -> fc1 + bias + ReLU + fc2-chunk, accumulated
    # in f32 VMEM; at the last chunk add fc2 bias + residual (the FFN input) and apply LN2.
    f = pl.program_id(1)

    @pl.when(f == 0)
    def _():
        acc_ref[...] = jnp.zeros_like(acc_ref)

    x = x_ref[...]
    w1 = w1_ref[...]
    xm = x.astype(jnp.bfloat16) if use_bf16 else x
    if use_bf16:
        w1 = w1.astype(jnp.bfloat16)
    hid = jnp.dot(xm, w1, preferred_element_type=jnp.float32)
    hid = jnp.maximum(hid + b1_ref[...].astype(jnp.float32), 0.0)   # fc1 bias + ReLU

    w2 = w2_ref[...]
    if use_bf16:
        hid = hid.astype(jnp.bfloat16)
        w2 = w2.astype(jnp.bfloat16)
    acc_ref[...] += jnp.dot(hid, w2, preferred_element_type=jnp.float32)

    @pl.when(f == pl.num_programs(1) - 1)
    def _():
        y = (acc_ref[...] + b2_ref[...].astype(jnp.float32)
             + x_ref[...].astype(jnp.float32))          # residual = FFN input (eval dropout)
        mean = jnp.mean(y, axis=-1, keepdims=True)
        c = y - mean
        var = jnp.mean(c * c, axis=-1, keepdims=True)
        n = c * lax.rsqrt(var + eps)
        out = n * g_ref[...].astype(jnp.float32) + bt_ref[...].astype(jnp.float32)
        o_ref[...] = out.astype(o_ref.dtype)


def _flash_attention_kernel(q_ref, k_ref, v_ref, o_ref, m_sc, l_sc, acc_sc,
                            *, inv_scale, num_heads, use_bf16):
    # q_ref: (tq, H, dk)   k_ref / v_ref: (tkv, H, dk)   o_ref: (tq, H, dk)
    # Online softmax over the KV grid axis; all heads handled per step.
    ki = pl.program_id(2)

    @pl.when(ki == 0)
    def _():
        m_sc[...] = jnp.full(m_sc.shape, -jnp.inf, jnp.float32)
        l_sc[...] = jnp.zeros_like(l_sc)
        acc_sc[...] = jnp.zeros_like(acc_sc)

    q = q_ref[...].astype(jnp.float32) * inv_scale      # fold 1/sqrt(dk) into Q
    k = k_ref[...]
    v = v_ref[...]
    mm_dtype = jnp.bfloat16 if use_bf16 else jnp.float32

    for h in range(num_heads):                          # static unroll over heads
        qh = q[:, h, :].astype(mm_dtype)                # (tq, dk)
        kh = k[:, h, :].astype(mm_dtype)                # (tkv, dk)
        s = lax.dot_general(qh, kh, (((1,), (1,)), ((), ())),
                            preferred_element_type=jnp.float32)      # (tq, tkv)
        m_prev = m_sc[h]                                # (tq, 1)
        m_new = jnp.maximum(m_prev, jnp.max(s, axis=-1, keepdims=True))
        alpha = jnp.exp(m_prev - m_new)
        p = jnp.exp(s - m_new)                          # unnormalised probabilities
        l_sc[h] = alpha * l_sc[h] + jnp.sum(p, axis=-1, keepdims=True)
        pv = jnp.dot(p.astype(mm_dtype), v[:, h, :].astype(mm_dtype),
                     preferred_element_type=jnp.float32)              # (tq, dk)
        acc_sc[h] = alpha * acc_sc[h] + pv
        m_sc[h] = m_new

    @pl.when(ki == pl.num_programs(2) - 1)
    def _():
        for h in range(num_heads):
            inv_l = pl.reciprocal(l_sc[h], approx=use_bf16)
            o_ref[:, h, :] = (acc_sc[h] * inv_l).astype(o_ref.dtype)


# ---------------------------------------------------------------------------
# pallas_call wrappers
# ---------------------------------------------------------------------------
def _linear(x, w, b, activation=None, use_bf16=False):
    M, K = x.shape
    _, N = w.shape
    tm = _pick_tile(M, _ROW_TILE_CAP, 8)
    tn = _pick_tile(N, _LANE_TILE_CAP, 128)
    tk = _pick_tile(K, _LANE_TILE_CAP, 128)
    return pl.pallas_call(
        functools.partial(_linear_kernel, activation=activation, use_bf16=use_bf16),
        out_shape=jax.ShapeDtypeStruct((M, N), x.dtype),
        grid_spec=pltpu.PrefetchScalarGridSpec(
            num_scalar_prefetch=0,
            grid=(M // tm, N // tn, K // tk),
            in_specs=[
                pl.BlockSpec((tm, tk), lambda i, j, k: (i, k)),
                pl.BlockSpec((tk, tn), lambda i, j, k: (k, j)),
                pl.BlockSpec((1, tn), lambda i, j, k: (0, j)),
            ],
            out_specs=pl.BlockSpec((tm, tn), lambda i, j, k: (i, j)),
            scratch_shapes=[pltpu.VMEM((tm, tn), jnp.float32)],
        ),
        compiler_params=pltpu.CompilerParams(
            dimension_semantics=("parallel", "parallel", "arbitrary"),
            vmem_limit_bytes=_vmem_limit(
                ((tm, tk), x.dtype), ((tk, tn), w.dtype), ((1, tn), b.dtype),
                ((tm, tn), x.dtype), scratch_bytes=tm * tn * 4),
        ),
    )(x, w, b)


def _linear_residual_ln(x, w, b, residual, gamma, beta, eps=1e-5, use_bf16=False):
    M, K = x.shape
    _, N = w.shape          # N == d_model; kept un-tiled (LayerNorm needs full rows)
    tm = _pick_tile(M, _ROW_TILE_CAP, 8)
    tk = _pick_tile(K, _LANE_TILE_CAP, 128)
    return pl.pallas_call(
        functools.partial(_linear_residual_ln_kernel, eps=eps, use_bf16=use_bf16),
        out_shape=jax.ShapeDtypeStruct((M, N), x.dtype),
        grid_spec=pltpu.PrefetchScalarGridSpec(
            num_scalar_prefetch=0,
            grid=(M // tm, K // tk),
            in_specs=[
                pl.BlockSpec((tm, tk), lambda i, k: (i, k)),
                pl.BlockSpec((tk, N), lambda i, k: (k, 0)),
                pl.BlockSpec((1, N), lambda i, k: (0, 0)),
                pl.BlockSpec((tm, N), lambda i, k: (i, 0)),   # residual rows
                pl.BlockSpec((1, N), lambda i, k: (0, 0)),    # gamma
                pl.BlockSpec((1, N), lambda i, k: (0, 0)),    # beta
            ],
            out_specs=pl.BlockSpec((tm, N), lambda i, k: (i, 0)),
            scratch_shapes=[pltpu.VMEM((tm, N), jnp.float32)],
        ),
        compiler_params=pltpu.CompilerParams(
            dimension_semantics=("parallel", "arbitrary"),
            vmem_limit_bytes=_vmem_limit(
                ((tm, tk), x.dtype), ((tk, N), w.dtype), ((tm, N), residual.dtype),
                ((tm, N), x.dtype), ((1, N), b.dtype), ((1, N), gamma.dtype),
                ((1, N), beta.dtype), scratch_bytes=tm * N * 4),
        ),
    )(x, w, b, residual, gamma, beta)


def _ffn_residual_ln(x, w1, b1, w2, b2, gamma, beta, eps=1e-5, use_bf16=False):
    M, D = x.shape
    _, FF = w1.shape
    tm = _pick_tile(M, _ROW_TILE_CAP, 8)
    tf = _pick_tile(FF, _LANE_TILE_CAP, 128)
    return pl.pallas_call(
        functools.partial(_ffn_kernel, eps=eps, use_bf16=use_bf16),
        out_shape=jax.ShapeDtypeStruct((M, D), x.dtype),
        grid_spec=pltpu.PrefetchScalarGridSpec(
            num_scalar_prefetch=0,
            grid=(M // tm, FF // tf),
            in_specs=[
                pl.BlockSpec((tm, D), lambda i, f: (i, 0)),   # x1 (also the residual)
                pl.BlockSpec((D, tf), lambda i, f: (0, f)),   # w_fc1 chunk
                pl.BlockSpec((1, tf), lambda i, f: (0, f)),   # b_fc1 chunk
                pl.BlockSpec((tf, D), lambda i, f: (f, 0)),   # w_fc2 chunk
                pl.BlockSpec((1, D), lambda i, f: (0, 0)),    # b_fc2
                pl.BlockSpec((1, D), lambda i, f: (0, 0)),    # ln2 gamma
                pl.BlockSpec((1, D), lambda i, f: (0, 0)),    # ln2 beta
            ],
            out_specs=pl.BlockSpec((tm, D), lambda i, f: (i, 0)),
            scratch_shapes=[pltpu.VMEM((tm, D), jnp.float32)],
        ),
        compiler_params=pltpu.CompilerParams(
            dimension_semantics=("parallel", "arbitrary"),
            vmem_limit_bytes=_vmem_limit(
                ((tm, D), x.dtype), ((D, tf), w1.dtype), ((1, tf), b1.dtype),
                ((tf, D), w2.dtype), ((1, D), b2.dtype), ((1, D), gamma.dtype),
                ((1, D), beta.dtype), ((tm, D), x.dtype),
                scratch_bytes=tm * D * 4),
        ),
    )(x, w1, b1, w2, b2, gamma, beta)


def _flash_attention(qkv, num_heads, use_bf16=False):
    # qkv: (B, S, 3, H, dk) — q/k/v are read straight from this array via BlockSpecs
    # (no XLA transposes); output is written in (B, S, H, dk) combined-head layout.
    B, S, three, H, dk = qkv.shape
    assert three == 3 and H == num_heads
    tq = _pick_tile(S, 256, 8)
    tkv = _pick_tile(S, 512, 8)
    inv_scale = 1.0 / (dk ** 0.5)

    q_spec = pl.BlockSpec((None, tq, None, H, dk), lambda b, qi, ki: (b, qi, 0, 0, 0))
    k_spec = pl.BlockSpec((None, tkv, None, H, dk), lambda b, qi, ki: (b, ki, 1, 0, 0))
    v_spec = pl.BlockSpec((None, tkv, None, H, dk), lambda b, qi, ki: (b, ki, 2, 0, 0))
    out_spec = pl.BlockSpec((None, tq, H, dk), lambda b, qi, ki: (b, qi, 0, 0))

    return pl.pallas_call(
        functools.partial(_flash_attention_kernel, inv_scale=inv_scale,
                          num_heads=H, use_bf16=use_bf16),
        out_shape=jax.ShapeDtypeStruct((B, S, H, dk), qkv.dtype),
        grid_spec=pltpu.PrefetchScalarGridSpec(
            num_scalar_prefetch=0,
            grid=(B, S // tq, S // tkv),
            in_specs=[q_spec, k_spec, v_spec],
            out_specs=out_spec,
            scratch_shapes=[
                pltpu.VMEM((H, tq, 1), jnp.float32),    # running max
                pltpu.VMEM((H, tq, 1), jnp.float32),    # running denominator
                pltpu.VMEM((H, tq, dk), jnp.float32),   # running output accumulator
            ],
        ),
        compiler_params=pltpu.CompilerParams(
            dimension_semantics=("parallel", "parallel", "arbitrary"),
            vmem_limit_bytes=_vmem_limit(
                ((tq, H, dk), qkv.dtype), ((tkv, H, dk), qkv.dtype),
                ((tkv, H, dk), qkv.dtype), ((tq, H, dk), qkv.dtype),
                scratch_bytes=H * tq * (dk + 2 * 128) * 4),
        ),
    )(qkv, qkv, qkv)


# ---------------------------------------------------------------------------
# Parameter preparation + EncoderLayer forward
# ---------------------------------------------------------------------------
def prepare_params(params):
    """Hoist the fused-QKV weight/bias concatenation out of the per-call hot path."""
    p = dict(params)
    p["w_qkv"] = jnp.concatenate([params["w_q"], params["w_k"], params["w_v"]], axis=1)
    p["b_qkv"] = jnp.concatenate([params["b_q"], params["b_k"], params["b_v"]], axis=1)
    return p


def encoder_layer_forward(x, params, num_heads, eps=1e-5, use_bf16_matmul=False):
    """x: (B, S, D). Mirrors EncoderLayer.forward with mask=None, eval-mode dropout."""
    B, S, D = x.shape
    assert D % num_heads == 0, "d_model must be divisible by num_heads"
    H = num_heads
    dk = D // H
    M = B * S
    x_flat = x.reshape(M, D)

    if "w_qkv" in params:
        w_qkv, b_qkv = params["w_qkv"], params["b_qkv"]
    else:                       # fallback; prefer prepare_params() once ahead of time
        prepared = prepare_params(params)
        w_qkv, b_qkv = prepared["w_qkv"], prepared["b_qkv"]

    # --- self attention -------------------------------------------------------
    qkv = _linear(x_flat, w_qkv, b_qkv, use_bf16=use_bf16_matmul)       # (M, 3D)
    qkv = qkv.reshape(B, S, 3, H, dk)                                   # free reshape
    attn = _flash_attention(qkv, H, use_bf16=use_bf16_matmul)           # (B, S, H, dk)
    attn_flat = attn.reshape(M, D)                                      # free reshape

    # W_o projection fused with residual-add + LayerNorm1.
    x1 = _linear_residual_ln(attn_flat, params["w_o"], params["b_o"],
                             residual=x_flat, gamma=params["ln1_g"],
                             beta=params["ln1_b"], eps=eps, use_bf16=use_bf16_matmul)

    # --- feed forward (fc1 + ReLU + fc2 + residual + LN2, fully fused) ---------
    out = _ffn_residual_ln(x1, params["w_fc1"], params["b_fc1"],
                           params["w_fc2"], params["b_fc2"],
                           params["ln2_g"], params["ln2_b"], eps=eps,
                           use_bf16=use_bf16_matmul)
    return out.reshape(B, S, D)


# ---------------------------------------------------------------------------
# Pure-JAX reference (same math as the PyTorch module, eval-mode dropout)
# ---------------------------------------------------------------------------
def ref_encoder_layer(x, params, num_heads, eps=1e-5):
    B, S, D = x.shape
    H = num_heads
    dk = D // H

    def lin(t, w, b):
        return t @ w + b[0]

    def split(t):
        return jnp.transpose(t.reshape(B, S, H, dk), (0, 2, 1, 3))

    def ln(t, g, b):
        mu = t.mean(-1, keepdims=True)
        var = ((t - mu) ** 2).mean(-1, keepdims=True)
        return (t - mu) / jnp.sqrt(var + eps) * g[0] + b[0]

    Q = split(lin(x, params["w_q"], params["b_q"]))
    K = split(lin(x, params["w_k"], params["b_k"]))
    V = split(lin(x, params["w_v"], params["b_v"]))
    s = jnp.einsum("bhqd,bhkd->bhqk", Q, K) / (dk ** 0.5)
    p = jax.nn.softmax(s, axis=-1)
    o = jnp.einsum("bhqk,bhkd->bhqd", p, V)
    o = jnp.transpose(o, (0, 2, 1, 3)).reshape(B, S, D)
    attn_out = lin(o, params["w_o"], params["b_o"])

    x1 = ln(x + attn_out, params["ln1_g"], params["ln1_b"])
    ff = lin(jnp.maximum(lin(x1, params["w_fc1"], params["b_fc1"]), 0.0),
             params["w_fc2"], params["b_fc2"])
    return ln(x1 + ff, params["ln2_g"], params["ln2_b"])


# ---------------------------------------------------------------------------
# Main
# ---------------------------------------------------------------------------
if __name__ == "__main__":
    B, S, D, H, FF = 2, 8, 32, 4, 64  # batch=2, seq=8, d_model=32, heads=4, d_ff=64

    key = jax.random.PRNGKey(0)
    ks = jax.random.split(key, 13)

    def w_init(k, fan_in, fan_out):
        return jax.random.normal(k, (fan_in, fan_out), jnp.float32) * (fan_in ** -0.5)

    def b_init(k, n):
        return jax.random.normal(k, (1, n), jnp.float32) * 0.02

    params = {
        "w_q": w_init(ks[0], D, D),    "b_q": b_init(ks[1], D),
        "w_k": w_init(ks[2], D, D),    "b_k": b_init(ks[3], D),
        "w_v": w_init(ks[4], D, D),    "b_v": b_init(ks[5], D),
        "w_o": w_init(ks[6], D, D),    "b_o": b_init(ks[7], D),
        "w_fc1": w_init(ks[8], D, FF), "b_fc1": b_init(ks[9], FF),
        "w_fc2": w_init(ks[10], FF, D), "b_fc2": b_init(ks[11], D),
        "ln1_g": jnp.ones((1, D), jnp.float32), "ln1_b": jnp.zeros((1, D), jnp.float32),
        "ln2_g": jnp.ones((1, D), jnp.float32), "ln2_b": jnp.zeros((1, D), jnp.float32),
    }
    params = prepare_params(params)   # QKV concat hoisted out of the hot path

    x = jax.random.normal(ks[12], (B, S, D), jnp.float32)

    # f32 MXU path (exact-ish) vs pure-JAX reference.
    out = jax.block_until_ready(encoder_layer_forward(x, params, num_heads=H))
    ref = ref_encoder_layer(x, params, num_heads=H)
    assert out.shape == (B, S, D)
    assert jnp.allclose(out, ref, atol=2e-3, rtol=2e-3), "f32 path mismatch vs reference"

    # bf16 MXU-operand path (v6e / v7x optimisation) — relaxed tolerance.
    out_bf16 = jax.block_until_ready(
        encoder_layer_forward(x, params, num_heads=H, use_bf16_matmul=True))
    assert jnp.allclose(out_bf16, ref, atol=2e-1, rtol=1e-1), "bf16 path mismatch vs reference"

    print("KERNEL_OK")
</pallas_src>

<mosaic_0001>
module attributes {stable_mosaic.version = 11 : i64} {
  func.func @_linear_kernel(%arg0: i32, %arg1: i32, %arg2: i32, %arg3: memref<16x32xf32, #tpu.memory_space<vmem>>, %arg4: memref<32x96xf32, #tpu.memory_space<vmem>>, %arg5: memref<1x96xf32, #tpu.memory_space<vmem>>, %arg6: memref<16x96xf32, #tpu.memory_space<vmem>>, %arg7: memref<16x96xf32, #tpu.memory_space<vmem>>) attributes {dimension_semantics = [#tpu.dimension_semantics<parallel>, #tpu.dimension_semantics<parallel>, #tpu.dimension_semantics<arbitrary>], iteration_bounds = array<i64: 1, 1, 1>, scalar_prefetch = 0 : i64, scratch_operands = 1 : i64, tpu.core_type = #tpu.core_type<tc>, window_params = [{transform_indices = @transform_0, window_bounds = array<i64: 16, 32>}, {transform_indices = @transform_1, window_bounds = array<i64: 32, 96>}, {transform_indices = @transform_2, window_bounds = array<i64: 1, 96>}, {transform_indices = @transform_3, window_bounds = array<i64: 16, 96>}]} {
    %c0_i32 = arith.constant 0 : i32
    %0 = arith.cmpi eq, %arg2, %c0_i32 : i32
    %1 = arith.extui %0 : i1 to i32
    %c0_i32_0 = arith.constant 0 : i32
    %2 = arith.cmpi ne, %1, %c0_i32_0 : i32
    scf.if %2 {
      %cst_10 = arith.constant 0.000000e+00 : f32
      %12 = vector.broadcast %cst_10 : f32 to vector<16x96xf32>
      %c0_11 = arith.constant 0 : index
      %c0_12 = arith.constant 0 : index
      %13 = vector.load %arg7[%c0_11, %c0_12] : memref<16x96xf32, #tpu.memory_space<vmem>>, vector<16x96xf32>
      tpu.vector_store %arg7[%c0_11, %c0_12], %12 {strides = array<i32>} : memref<16x96xf32, #tpu.memory_space<vmem>>, vector<16x96xf32>,
    } else {
    }
    %c0 = arith.constant 0 : index
    %c0_1 = arith.constant 0 : index
    %3 = vector.load %arg3[%c0, %c0_1] : memref<16x32xf32, #tpu.memory_space<vmem>>, vector<16x32xf32>
    %c0_2 = arith.constant 0 : index
    %c0_3 = arith.constant 0 : index
    %4 = vector.load %arg4[%c0_2, %c0_3] : memref<32x96xf32, #tpu.memory_space<vmem>>, vector<32x96xf32>
    %c0_4 = arith.constant 0 : index
    %c0_5 = arith.constant 0 : index
    %5 = vector.load %arg7[%c0_4, %c0_5] : memref<16x96xf32, #tpu.memory_space<vmem>>, vector<16x96xf32>
    %cst = arith.constant dense<0.000000e+00> : vector<16x96xf32>
    %6 = tpu.matmul %3, %4, %cst {dimension_numbers = #tpu.dot_dimension_numbers<[1], [0], [0], [1], [0, 0, 1, 1], [], []>} : vector<16x32xf32>, vector<32x96xf32>, vector<16x96xf32> -> vector<16x96xf32>
    %7 = arith.addf %5, %6 : vector<16x96xf32>
    %c0_6 = arith.constant 0 : index
    %c0_7 = arith.constant 0 : index
    %8 = vector.load %arg7[%c0_6, %c0_7] : memref<16x96xf32, #tpu.memory_space<vmem>>, vector<16x96xf32>
    tpu.vector_store %arg7[%c0_6, %c0_7], %7 {strides = array<i32>} : memref<16x96xf32, #tpu.memory_space<vmem>>, vector<16x96xf32>,
    %c0_i32_8 = arith.constant 0 : i32
    %9 = arith.cmpi eq, %arg2, %c0_i32_8 : i32
    %10 = arith.extui %9 : i1 to i32
    %c0_i32_9 = arith.constant 0 : i32
    %11 = arith.cmpi ne, %10, %c0_i32_9 : i32
    scf.if %11 {
      %c0_10 = arith.constant 0 : index
      %c0_11 = arith.constant 0 : index
      %12 = vector.load %arg7[%c0_10, %c0_11] : memref<16x96xf32, #tpu.memory_space<vmem>>, vector<16x96xf32>
      %c0_12 = arith.constant 0 : index
      %c0_13 = arith.constant 0 : index
      %13 = vector.load %arg5[%c0_12, %c0_13] : memref<1x96xf32, #tpu.memory_space<vmem>>, vector<1x96xf32>
      %14 = vector.broadcast %13 : vector<1x96xf32> to vector<16x96xf32>
      %15 = arith.addf %12, %14 : vector<16x96xf32>
      %c0_14 = arith.constant 0 : index
      %c0_15 = arith.constant 0 : index
      %16 = vector.load %arg6[%c0_14, %c0_15] : memref<16x96xf32, #tpu.memory_space<vmem>>, vector<16x96xf32>
      tpu.vector_store %arg6[%c0_14, %c0_15], %15 {strides = array<i32>} : memref<16x96xf32, #tpu.memory_space<vmem>>, vector<16x96xf32>,
    } else {
    }
    return
  }
  func.func @transform_0(%arg0: i32, %arg1: i32, %arg2: i32) -> (i32, i32) {
    %c0_i32 = arith.constant 0 : i32
    return %arg0, %arg2 : i32, i32
  }
  func.func @transform_1(%arg0: i32, %arg1: i32, %arg2: i32) -> (i32, i32) {
    %c0_i32 = arith.constant 0 : i32
    return %arg2, %arg1 : i32, i32
  }
  func.func @transform_2(%arg0: i32, %arg1: i32, %arg2: i32) -> (i32, i32) {
    %c0_i32 = arith.constant 0 : i32
    %c0_i32_0 = arith.constant 0 : i32
    return %c0_i32, %arg1 : i32, i32
  }
  func.func @transform_3(%arg0: i32, %arg1: i32, %arg2: i32) -> (i32, i32) {
    %c0_i32 = arith.constant 0 : i32
    return %arg0, %arg1 : i32, i32
  }
}

</mosaic_0001>

<bundles_post_ra>
// kernel: tpu_custom_call.1
= control target key start
LH: loop header
LB: loop body
LE: loop exit
PB: predicated region body
PF: predicated region fallthrough
CT: control target
= control target key end

     0   :  { %8 = vsyncpa [#allocation4], 0  ;;  %s365_s0 = inlined_call_operand.hbm [shape: f32[16,32], index: 0, kind: input, shape index: {}]   ;;  %s366_s1 = inlined_call_operand.hbm [shape: f32[32,96], index: 1, kind: input, shape index: {}]   ;;  %s367_s2 = inlined_call_operand.vmem [shape: f32[1,96], index: 2, kind: input, shape index: {}]   ;;  %s368_s3 = inlined_call_operand.hbm [shape: f32[16,96], index: 3, kind: output, shape index: {}]  }
   0x1   :  { %9 = vsyncpa [#allocation7], 0 }
   0x2   :  { %10 = vsyncpa [#allocation5], 0  ;;  %s285_s12 = smov [#allocation3]   ;;  %s213_s16 = scalar_lea.hbm %s365_s0, 256 }
   0x3   :  { %s16_s13 = sshll.u32 %s285_s12, 4  ;;  %p214_p0 = scmp.ne.s32.totalorder %s365_s0, %s213_s16  ;;  %s17_s13 = int_to_ptr.vmem [resolvable:$true] %s16_s13 }
   0x4   :  { %p217_p1 = scmp.lt.u32.totalorder %s213_s16, %s365_s0 }
   0x6   :  { %p219_p2 = pnand %p217_p1, %p214_p0 }
   0x8   :  { %222 = shalt.err (!%p219_p2)
}
   0x9   :  { %s223_s21 = scalar_lea.vmem %s17_s13, 256  ;;  %p228_p4 = scmp.lt.s32.totalorder %s17_s13, %s17_s13 }
   0xa   :  { %p224_p3 = scmp.ne.s32.totalorder %s17_s13, %s223_s21  ;;  %p229_p5 = scmp.lt.s32.totalorder %s223_s21, %s223_s21 }
   0xc   :  { %p230_p6 = por %p229_p5, %p228_p4 }
   0xe   :  { %p231_p7 = pnand %p230_p6, %p224_p3 }
  0x10   :  { %234 = shalt.err (!%p231_p7)
}
  0x11   :  { %s286_s22 = smov 128   ;;  %s287_s23 = smov 8  }
  0x12   :  { %22 = dma.hbm_to_vmem [thread:$0]  %s365_s0, 256, %s17_s13, [#allocation4], %s286_s22, %s286_s22, %s287_s23  }
  0x13   :  { %s288_s26 = smov [#allocation6]   ;;  %s235_s30 = scalar_lea.hbm %s366_s1, 512 }
  0x14   :  { %s28_s27 = sshll.u32 %s288_s26, 4  ;;  %p236_p8 = scmp.ne.s32.totalorder %s366_s1, %s235_s30  ;;  %s29_s27 = int_to_ptr.vmem [resolvable:$true] %s28_s27 }
  0x15   :  { %p239_p9 = scmp.lt.u32.totalorder %s235_s30, %s366_s1 }
  0x17   :  { %p241_p10 = pnand %p239_p9, %p236_p8 }
  0x19   :  { %244 = shalt.err (!%p241_p10)
}
  0x1a   :  { %s245_s8 = scalar_lea.vmem %s29_s27, 512  ;;  %p250_p12 = scmp.lt.s32.totalorder %s29_s27, %s29_s27 }
  0x1b   :  { %p246_p11 = scmp.ne.s32.totalorder %s29_s27, %s245_s8  ;;  %p251_p13 = scmp.lt.s32.totalorder %s245_s8, %s245_s8 }
  0x1d   :  { %p252_p0 = por %p251_p13, %p250_p12 }
  0x1f   :  { %p253_p1 = pnand %p252_p0, %p246_p11 }
  0x21   :  { %256 = shalt.err (!%p253_p1)
}
  0x22   :  { %34 = dma.hbm_to_vmem [thread:$0]  %s366_s1, 512, %s29_s27, [#allocation7], %s286_s22, %s286_s22, %s287_s23  }
  0x23   :  { %279 = dma.done.wait [#allocation4], 256  }
  0x24   :  { %280 = vsyncadd [#allocation4], 4294967040 }
  0x25   :  { %281 = dma.done.wait [#allocation7], 512  }
  0x26   :  { %282 = vsyncadd [#allocation7], 4294966784  ;;  %vm47_vm0 = vcmask 785408   ;;  %v289_v0 = vmov 0.0   ;;  %vm58_vm1 = vcmask 261120   ;;  %v52_v1 = vld [vmem:[#allocation6] sm:$0xff] }
  0x27   :  { %49 = vst.msk [vmem:[#allocation2 + $0x8] sm:$0xff] %vm47_vm0, %v289_v0  ;;  %48 = vst.msk [vmem:[#allocation2] sm:$0xff] %vm47_vm0, %v289_v0  ;;  %v53_v2 = vld [vmem:[#allocation6 + $0x8] sm:$0xff]  ;;  %v54_v3 = vld [vmem:[#allocation6 + $0x10] sm:$0xff]  ;;  %s290_s11 = smov [#allocation8]  }
  0x28   :  { %v199_v4 = vpack.c.bf16 %v53_v2, %v52_v1  ;;  %v55_v5 = vld [vmem:[#allocation6 + $0x18] sm:$0xff]  ;;  %v50_v6 = vld [vmem:[#allocation3] sm:$0xff]  ;;  %v181_v15 = vld [vmem:[%s367_s2] ss:$0 sm:$0xff]  ;;  %s166_s12 = sshll.u32 %s290_s11, 4  ;;  %s167_s12 = int_to_ptr.vmem [resolvable:$true] %s166_s12 }
  0x29   :  { %v203_v7 = vpack.c.bf16 %v55_v5, %v54_v3  ;;  %196 = vmatprep.mubr.msk.f32.mxu0 %vm58_vm1, %v50_v6  ;;  %v51_v8 = vld [vmem:[#allocation3 + $0x8] sm:$0xff]  ;;  %s257_s13 = scalar_lea.vmem %s167_s12, 256  ;;  %p262_p3 = scmp.lt.s32.totalorder %s167_s12, %s167_s12 }
  0x2a   :  { %200 = vmatprep.subr.bf16.mxu0 %v199_v4  ;;  %p258_p2 = scmp.ne.s32.totalorder %s167_s12, %s257_s13  ;;  %p263_p4 = scmp.lt.s32.totalorder %s257_s13, %s257_s13 }
  0x2b   :  { %202 = vmatpush3.bf16.msra.mxu0 %v199_v4 }
  0x2c   :  { %204 = vmatprep.subr.bf16.mxu0 %v203_v7  ;;  %p264_p5 = por %p263_p4, %p262_p3 }
  0x2e   :  { %v57_v9 = vld [vmem:[#allocation2 + $0x8] sm:$0xff]  ;;  %v56_v10 = vld [vmem:[#allocation2] sm:$0xff]  ;;  %p265_p6 = pnand %p264_p5, %p258_p2 }
  0x2f   :  { %206 = vmatpush3.bf16.msra.mxu0 %v203_v7 }
  0x32   :  { %197 = vmatmul.mubr.msk.f32.vlgmr.msra.gmra.mrb[0].mxu0 %vm58_vm1, %v51_v8 }
 0x105   :  { %v198_v11 = vpop.f32.mrb[0].mxu0 }
 0x106   :  { %v141_v12 = vadd.f32 %v198_v11, %v57_v9  ;;  %v131_v13 = vpop.f32.mrb[1].mxu0 }
 0x107   :  { %v140_v14 = vadd.f32 %v131_v13, %v56_v10 }
 0x108   :  { %144 = vst.msk [vmem:[#allocation2 + $0x8] sm:$0xff] %vm47_vm0, %v141_v12 }
 0x109   :  { %143 = vst.msk [vmem:[#allocation2] sm:$0xff] %vm47_vm0, %v140_v14 }
 0x10f   :  { %v149_v16 = vld [vmem:[#allocation2 + $0x8] sm:$0xff] }
 0x110   :  { %v148_v17 = vld [vmem:[#allocation2] sm:$0xff]  ;;  %v158_v18 = vadd.f32 %v181_v15, %v149_v16 }
 0x111   :  { %v157_v19 = vadd.f32 %v181_v15, %v148_v17 }
 0x112   :  { %160 = vst.msk [vmem:[#allocation8 + $0x8] sm:$0xff] %vm47_vm0, %v158_v18 }
 0x113   :  { %159 = vst.msk [vmem:[#allocation8] sm:$0xff] %vm47_vm0, %v157_v19 }
 0x114   :  { %268 = shalt.err (!%p265_p6)
}
 0x115   :  { %s269_s15 = scalar_lea.hbm %s368_s3, 256 }
 0x116   :  { %p270_p7 = scmp.ne.s32.totalorder %s368_s3, %s269_s15  ;;  %p273_p8 = scmp.lt.u32.totalorder %s269_s15, %s368_s3 }
 0x118   :  { %p275_p9 = pnand %p273_p8, %p270_p7 }
 0x11a   :  { %278 = shalt.err (!%p275_p9)
}
 0x11b   :  { %172 = dma.vmem_to_hbm [thread:$0]  %s167_s12, 256, %s368_s3, [#allocation5], %s286_s22, %s286_s22, %s287_s23  }
 0x11c   :  { %283 = dma.done.wait [#allocation5], 256  }
 0x11d   :  { %284 = vsyncadd [#allocation5], 4294967040 }
 0x11e   :  { %176 = vsyncpa [#allocation4], 1 }
 0x11f   :  { %177 = vsyncpa [#allocation7], 1 }
 0x120   :  { %178 = vsyncpa [#allocation5], 1 }

</bundles_post_ra>
